<compile_context>
chip_gen: v7x
topology: tpu7x:2x2x1
jax: 0.10.0
libtpu: 0.0.40
codegen_flags: <defaults>
</compile_context>

<pallas_src>
import functools

import jax
import jax.numpy as jnp
from jax.experimental import pallas as pl
from jax.experimental.pallas import tpu as pltpu


def _elu(v):
    # PyTorch F.elu with alpha=1.0 (elementwise, f32)
    return jnp.where(v > 0, v, jnp.exp(v) - 1.0)


def _round_up(a, m):
    return ((a + m - 1) // m) * m


def _pad_unit(moe, d):
    """Per-expert output width padded so the moe lane-groups tile 128 lanes."""
    if 128 % moe == 0:
        return _round_up(d, 128 // moe)
    return d


def _is_pow2(n):
    return n >= 1 and (n & (n - 1)) == 0


# --------------------------------------------------------------------------
# Kernel
# --------------------------------------------------------------------------

def vae_decoder_kernel(cfg, x_ref, w_ref, o_ref):
    moe, h1, h2 = cfg["moe"], cfg["h1"], cfg["h2"]
    d1, d2, d3 = cfg["d1"], cfg["d2"], cfg["d3"]
    xr, xw_cols = cfg["xrows"], cfg["xw_cols"]
    off = cfg["off"]
    wdt = w_ref.dtype

    x = x_ref[...]                                            # (B, xrows) f32
    x_w = x if x.dtype == wdt else x.astype(wdt)

    # -- ONE fused x matmul: [l1(x)+b1 | gate1(x)+gb1 | z@wz2+b2 | z@wz3+b3] --
    xw = jnp.dot(x_w, w_ref[0:xr, 0:xw_cols],
                 preferred_element_type=jnp.float32)          # (B, xw_cols)

    # -------------------- gating chain: elu -> elu -> softmax ---------------
    g = _elu(xw[:, off["g1"]:off["g1"] + 64])
    g = _elu(jnp.dot(g.astype(wdt), w_ref[:, off["gw2"]:off["gw2"] + 64],
                     preferred_element_type=jnp.float32)
             + w_ref[0:1, off["gb2"]:off["gb2"] + 64].astype(jnp.float32))
    logits = (jnp.dot(g.astype(wdt), w_ref[:, off["gw3"]:off["gw3"] + moe],
                      preferred_element_type=jnp.float32)
              + w_ref[0:1, off["gb3"]:off["gb3"] + moe].astype(jnp.float32))
    lmax = jnp.max(logits, axis=-1, keepdims=True)
    e = jnp.exp(logits - lmax)
    para = e / jnp.sum(e, axis=-1, keepdims=True)             # (B, moe), exact

    # -- broadcast para across expert lane-groups with one tiny selector matmul
    p_cache = {}

    def para_bcast(d):
        if d not in p_cache:
            o = off["sel"][d]
            sel = w_ref[0:moe, o:o + moe * d].astype(jnp.float32)
            p_cache[d] = jnp.dot(para, sel, preferred_element_type=jnp.float32)
        return p_cache[d]

    def moe_sum(y, d):
        # y: (B, moe*d); returns para-weighted sum over the moe lane groups.
        t = para_bcast(d) * y
        if _is_pow2(moe):
            s = (moe * d) // 2
            while s >= d:                       # log2(moe) roll-add tree (XLU)
                t = t + pltpu.roll(t, s, axis=1)
                s //= 2
            return t                            # group-sum replicated per group
        acc = t[:, 0:d]                         # fallback for non-pow2 moe
        for i in range(1, moe):
            acc = acc + t[:, i * d:(i + 1) * d]
        return acc

    # -------------------- expert layer 1 (bias folded into xw) --------------
    h = _elu(moe_sum(xw[:, 0:moe * d1], d1)[:, 0:h1])

    # -------------------- expert layer 2: h @ W2h + (z@Wz2 + b2) -------------
    y2 = (jnp.dot(h.astype(wdt), w_ref[0:h1, off["w2h"]:off["w2h"] + moe * d2],
                  preferred_element_type=jnp.float32)
          + xw[:, off["wz2"]:off["wz2"] + moe * d2])
    h = _elu(moe_sum(y2, d2)[:, 0:h2])

    # -------------------- expert layer 3 (no activation) ---------------------
    y3 = (jnp.dot(h.astype(wdt), w_ref[0:h2, off["w3h"]:off["w3h"] + moe * d3],
                  preferred_element_type=jnp.float32)
          + xw[:, off["wz3"]:off["wz3"] + moe * d3])
    o_ref[...] = moe_sum(y3, d3).astype(o_ref.dtype)          # lane-dense store


# --------------------------------------------------------------------------
# One-time parameter packing into a single VMEM slab
# --------------------------------------------------------------------------

def prepare_params(params, weights_dtype=jnp.float32):
    """Pack ALL parameters into one (rows, cols) slab.

    Column blocks start at 128-aligned offsets; per-expert widths are padded so
    moe groups tile 128 lanes; gate1 + all expert-layer biases are folded into
    the x matmul via a ones-lane of the padded input (row `input_size`).
    bf16 weights only pay off at large batch (MXU-bound); default is f32.
    """
    moe, input_size, h1 = params["w1"].shape
    h2 = params["w2"].shape[2]
    pred = params["w3"].shape[2]
    latent = params["w2"].shape[1] - h1
    assert params["w3"].shape[1] - h2 == latent
    mw = input_size - latent                 # width of the "motions" part of x

    d1 = _pad_unit(moe, h1)
    d2 = _pad_unit(moe, h2)
    d3 = _pad_unit(moe, pred)

    xrows = _round_up(input_size + 1, 8)     # features + ones (bias) lane
    rows = _round_up(max(xrows, h1, h2, 64, moe), 8)

    # 128-aligned column allocator
    col = [0]

    def alloc(width):
        start = col[0]
        col[0] = _round_up(start + width, 128)
        return start

    off_w1 = alloc(moe * d1)                 # == 0 (kernel relies on this)
    off_g1 = alloc(64)
    off_wz2 = alloc(moe * d2)
    off_wz3 = alloc(moe * d3)
    xw_cols = col[0]                         # x matmul covers cols [0, xw_cols)
    off_w2h = alloc(moe * d2)
    off_w3h = alloc(moe * d3)
    off_gw2 = alloc(64)
    off_gw3 = alloc(moe)
    off_gb2 = alloc(64)
    off_gb3 = alloc(moe)
    off_sel = {}
    for d in (d1, d2, d3):
        if d not in off_sel:
            off_sel[d] = alloc(moe * d)
    cols = _round_up(col[0], 128)

    def flat_w(w, d):                        # (moe, din, dout) -> (din, moe*d)
        m, din, dout = w.shape
        if d != dout:
            w = jnp.pad(w, ((0, 0), (0, 0), (0, d - dout)))
        return jnp.transpose(w, (1, 0, 2)).reshape(din, m * d)

    def flat_b(b, d):                        # (moe, 1, dout) -> (1, moe*d)
        return flat_w(b, d)

    slab = jnp.zeros((rows, cols), jnp.float32)
    br = input_size                          # bias row index (== ones lane of x_pad)

    # x-block: expert layer 1, gate1, z-columns of layers 2/3; biases folded.
    slab = slab.at[0:input_size, off_w1:off_w1 + moe * d1].set(flat_w(params["w1"], d1))
    slab = slab.at[br:br + 1, off_w1:off_w1 + moe * d1].set(flat_b(params["b1"], d1))
    slab = slab.at[0:input_size, off_g1:off_g1 + 64].set(params["gw1"])
    slab = slab.at[br:br + 1, off_g1:off_g1 + 64].set(params["gb1"])
    slab = slab.at[mw:input_size, off_wz2:off_wz2 + moe * d2].set(
        flat_w(params["w2"][:, h1:, :], d2))
    slab = slab.at[br:br + 1, off_wz2:off_wz2 + moe * d2].set(flat_b(params["b2"], d2))
    slab = slab.at[mw:input_size, off_wz3:off_wz3 + moe * d3].set(
        flat_w(params["w3"][:, h2:, :], d3))
    slab = slab.at[br:br + 1, off_wz3:off_wz3 + moe * d3].set(flat_b(params["b3"], d3))

    # hidden-state expert weights
    slab = slab.at[0:h1, off_w2h:off_w2h + moe * d2].set(flat_w(params["w2"][:, :h1, :], d2))
    slab = slab.at[0:h2, off_w3h:off_w3h + moe * d3].set(flat_w(params["w3"][:, :h2, :], d3))

    # gate 2/3 weights + biases (128-aligned, row 0)
    slab = slab.at[0:64, off_gw2:off_gw2 + 64].set(params["gw2"])
    slab = slab.at[0:64, off_gw3:off_gw3 + moe].set(params["gw3"])
    slab = slab.at[0:1, off_gb2:off_gb2 + 64].set(params["gb2"])
    slab = slab.at[0:1, off_gb3:off_gb3 + moe].set(params["gb3"])

    # para -> lane-group broadcast selectors: kron(I_moe, ones(1, d))
    for d, o in off_sel.items():
        sel = jnp.kron(jnp.eye(moe, dtype=jnp.float32),
                       jnp.ones((1, d), jnp.float32))
        slab = slab.at[0:moe, o:o + moe * d].set(sel)

    slab = slab.astype(weights_dtype)

    out_cols = moe * d3 if _is_pow2(moe) else d3
    cfg = dict(moe=moe, h1=h1, h2=h2, pred=pred, latent=latent,
               input_size=input_size, xrows=xrows, xw_cols=xw_cols,
               d1=d1, d2=d2, d3=d3, out_cols=out_cols,
               off=dict(g1=off_g1, wz2=off_wz2, wz3=off_wz3,
                        w2h=off_w2h, w3h=off_w3h, gw2=off_gw2, gw3=off_gw3,
                        gb2=off_gb2, gb3=off_gb3, sel=off_sel))
    return dict(slab=slab, cfg=cfg)


# --------------------------------------------------------------------------
# Wrapper
# --------------------------------------------------------------------------

def vae_decoder_forward(prep, motions, z, *, block_b=256):
    """Matches VAE_decoder.forward(motions, z) for used_angles == 0."""
    # TODO(synk): used_angles > 0 path (extra angles concat) not implemented.
    cfg = prep["cfg"]
    slab = prep["slab"]
    input_size, xrows = cfg["input_size"], cfg["xrows"]
    pred, out_cols = cfg["pred"], cfg["out_cols"]

    x = jnp.concatenate([motions, z], axis=1).astype(jnp.float32)
    assert x.shape[1] == input_size
    batch = x.shape[0]

    # lane-pad the input: [features | 1.0 (bias lane) | zeros] -> (B, xrows)
    pad_tail = xrows - (input_size + 1)
    parts = [x, jnp.ones((batch, 1), jnp.float32)]
    if pad_tail:
        parts.append(jnp.zeros((batch, pad_tail), jnp.float32))
    x_pad = jnp.concatenate(parts, axis=1)

    # sublane batch pad (16 for bf16 weights so packed vregs are full)
    row_mult = 16 if slab.dtype == jnp.bfloat16 else 8
    kernel = functools.partial(vae_decoder_kernel, cfg)

    if batch <= block_b:
        # small batch: single gridless all-VMEM call (minimal launch overhead)
        b_pad = _round_up(batch, row_mult)
        if b_pad != batch:
            x_pad = jnp.pad(x_pad, ((0, b_pad - batch), (0, 0)))
        out = pl.pallas_call(
            kernel,
            out_shape=jax.ShapeDtypeStruct((b_pad, out_cols), jnp.float32),
            in_specs=[pl.BlockSpec(memory_space=pltpu.MemorySpace.VMEM),
                      pl.BlockSpec(memory_space=pltpu.MemorySpace.VMEM)],
            out_specs=pl.BlockSpec(memory_space=pltpu.MemorySpace.VMEM),
        )(x_pad, slab)
    else:
        # large batch: 1-D parallel grid over batch blocks (2 TCs on v7x,
        # vreg-pressure relief on v5e/v6e); weights stay resident (constant map).
        b_pad = _round_up(batch, block_b)
        if b_pad != batch:
            x_pad = jnp.pad(x_pad, ((0, b_pad - batch), (0, 0)))
        out = pl.pallas_call(
            kernel,
            out_shape=jax.ShapeDtypeStruct((b_pad, out_cols), jnp.float32),
            grid=(b_pad // block_b,),
            in_specs=[pl.BlockSpec((block_b, xrows), lambda i: (i, 0)),
                      pl.BlockSpec(slab.shape, lambda i: (0, 0))],
            out_specs=pl.BlockSpec((block_b, out_cols), lambda i: (i, 0)),
            compiler_params=pltpu.CompilerParams(
                dimension_semantics=("parallel",)),
        )(x_pad, slab)

    # TODO(synk): for repeated calls (autoregressive rollout) keep the weight
    # slab VMEM-resident across calls (cross-call prefetch / step batching)
    # instead of re-DMAing ~0.3 MiB of weights on every invocation.
    return out[:batch, :pred], (None, None)


# --------------------------------------------------------------------------
# Deterministic PyTorch-Linear-like init + pure-JAX reference
# --------------------------------------------------------------------------

def init_params(key, motion_size, used_motions, latent_size,
                predicted_size, h1, h2, moe, used_angles=0):
    input_size = (motion_size + used_angles) * (used_motions - 1) + latent_size

    def lin(k, din, dout):
        kw, kb = jax.random.split(k)
        bound = 1.0 / jnp.sqrt(jnp.float32(din))
        w = jax.random.uniform(kw, (din, dout), jnp.float32, -bound, bound)
        b = jax.random.uniform(kb, (1, dout), jnp.float32, -bound, bound)
        return w, b

    def moe_lin(k, din, dout):
        ws, bs = [], []
        for kk in jax.random.split(k, moe):
            w, b = lin(kk, din, dout)
            ws.append(w)
            bs.append(b)
        return jnp.stack(ws), jnp.stack(bs)   # (moe, din, dout), (moe, 1, dout)

    keys = jax.random.split(key, 6)
    gw1, gb1 = lin(keys[0], input_size, 64)
    gw2, gb2 = lin(keys[1], 64, 64)
    gw3, gb3 = lin(keys[2], 64, moe)
    w1, b1 = moe_lin(keys[3], input_size, h1)
    w2, b2 = moe_lin(keys[4], h1 + latent_size, h2)
    w3, b3 = moe_lin(keys[5], h2 + latent_size, predicted_size)
    return dict(gw1=gw1, gb1=gb1, gw2=gw2, gb2=gb2, gw3=gw3, gb3=gb3,
                w1=w1, b1=b1, w2=w2, b2=b2, w3=w3, b3=b3)


def reference_forward(params, motions, z):
    x = jnp.concatenate([motions, z], axis=1).astype(jnp.float32)
    g = jax.nn.elu(x @ params["gw1"] + params["gb1"][0])
    g = jax.nn.elu(g @ params["gw2"] + params["gb2"][0])
    para = jax.nn.softmax(g @ params["gw3"] + params["gb3"][0], axis=-1)

    def mix(inp, w, b):
        y = jnp.einsum("bd,mdh->mbh", inp, w) + b
        y = y * para.T[:, :, None]
        return jnp.sum(y, axis=0)

    h = jax.nn.elu(mix(x, params["w1"], params["b1"]))
    h = jnp.concatenate([h, z], axis=1)
    h = jax.nn.elu(mix(h, params["w2"], params["b2"]))
    h = jnp.concatenate([h, z], axis=1)
    return mix(h, params["w3"], params["b3"])


if __name__ == "__main__":
    motion_size, used_motions, latent_size = 8, 3, 8
    predicted_size, h1, h2, moe = 16, 32, 32, 4
    input_motion_dim = motion_size * (used_motions - 1)     # 16

    key = jax.random.PRNGKey(0)
    kp, km, kz, km2, kz2 = jax.random.split(key, 5)
    params = init_params(kp, motion_size, used_motions, latent_size,
                         predicted_size, h1, h2, moe)

    # ---- small batch: gridless all-VMEM path, f32 weights -------------------
    batch = 2
    motions = jax.random.normal(km, (batch, input_motion_dim), jnp.float32)
    z = jax.random.normal(kz, (batch, latent_size), jnp.float32)
    ref = reference_forward(params, motions, z)

    prep32 = prepare_params(params, jnp.float32)
    out32, _ = vae_decoder_forward(prep32, motions, z)
    out32 = jax.block_until_ready(out32)
    assert out32.shape == (batch, predicted_size)
    assert jnp.allclose(out32, ref, atol=1e-4, rtol=1e-4), (out32, ref)

    # ---- large batch: 1-D parallel batch grid, f32 weights ------------------
    batch_big = 300
    motions_b = jax.random.normal(km2, (batch_big, input_motion_dim), jnp.float32)
    z_b = jax.random.normal(kz2, (batch_big, latent_size), jnp.float32)
    ref_b = reference_forward(params, motions_b, z_b)

    out_big, _ = vae_decoder_forward(prep32, motions_b, z_b, block_b=256)
    out_big = jax.block_until_ready(out_big)
    assert out_big.shape == (batch_big, predicted_size)
    assert jnp.allclose(out_big, ref_b, atol=1e-4, rtol=1e-4), \
        float(jnp.max(jnp.abs(out_big - ref_b)))

    # ---- bf16 weight path (only worthwhile at large batch; f32 accumulate) --
    prep16 = prepare_params(params, jnp.bfloat16)
    out_bf, _ = vae_decoder_forward(prep16, motions_b, z_b, block_b=256)
    out_bf = jax.block_until_ready(out_bf)
    assert jnp.allclose(out_bf, ref_b, atol=1e-1, rtol=1e-1)

    print("KERNEL_OK")
</pallas_src>

<mosaic_0001>
module attributes {stable_mosaic.version = 11 : i64} {
  func.func @vae_decoder_kernel(%arg0: memref<8x32xf32, #tpu.memory_space<vmem>>, %arg1: memref<64x1408xf32, #tpu.memory_space<vmem>>, %arg2: memref<8x128xf32, #tpu.memory_space<vmem>>) attributes {dimension_semantics = [], scalar_prefetch = 0 : i64, scratch_operands = 0 : i64, tpu.core_type = #tpu.core_type<tc>} {
    %c0 = arith.constant 0 : index
    %c0_0 = arith.constant 0 : index
    %0 = vector.load %arg0[%c0, %c0_0] : memref<8x32xf32, #tpu.memory_space<vmem>>, vector<8x32xf32>
    %c0_1 = arith.constant 0 : index
    %c0_2 = arith.constant 0 : index
    %1 = vector.load %arg1[%c0_1, %c0_2] : memref<64x1408xf32, #tpu.memory_space<vmem>>, vector<32x512xf32>
    %cst = arith.constant dense<0.000000e+00> : vector<8x512xf32>
    %2 = tpu.matmul %0, %1, %cst {dimension_numbers = #tpu.dot_dimension_numbers<[1], [0], [0], [1], [0, 0, 1, 1], [], []>} : vector<8x32xf32>, vector<32x512xf32>, vector<8x512xf32> -> vector<8x512xf32>
    %3 = vector.extract_strided_slice %2 {offsets = [0, 128], sizes = [8, 64], strides = [1, 1]} : vector<8x512xf32> to vector<8x64xf32>
    %cst_3 = arith.constant 0.000000e+00 : f32
    %4 = vector.broadcast %cst_3 : f32 to vector<8x64xf32>
    %5 = arith.cmpf ogt, %3, %4 : vector<8x64xf32>
    %6 = math.exp %3 : vector<8x64xf32>
    %cst_4 = arith.constant 1.000000e+00 : f32
    %7 = vector.broadcast %cst_4 : f32 to vector<8x64xf32>
    %8 = arith.subf %6, %7 : vector<8x64xf32>
    %9 = arith.select %5, %3, %8 : vector<8x64xi1>, vector<8x64xf32>
    %c0_5 = arith.constant 0 : index
    %c768 = arith.constant 768 : index
    %10 = vector.load %arg1[%c0_5, %c768] : memref<64x1408xf32, #tpu.memory_space<vmem>>, vector<64x64xf32>
    %cst_6 = arith.constant dense<0.000000e+00> : vector<8x64xf32>
    %11 = tpu.matmul %9, %10, %cst_6 {dimension_numbers = #tpu.dot_dimension_numbers<[1], [0], [0], [1], [0, 0, 1, 1], [], []>} : vector<8x64xf32>, vector<64x64xf32>, vector<8x64xf32> -> vector<8x64xf32>
    %c0_7 = arith.constant 0 : index
    %c1024 = arith.constant 1024 : index
    %12 = vector.load %arg1[%c0_7, %c1024] : memref<64x1408xf32, #tpu.memory_space<vmem>>, vector<1x64xf32>
    %13 = vector.broadcast %12 : vector<1x64xf32> to vector<8x64xf32>
    %14 = arith.addf %11, %13 : vector<8x64xf32>
    %cst_8 = arith.constant 0.000000e+00 : f32
    %15 = vector.broadcast %cst_8 : f32 to vector<8x64xf32>
    %16 = arith.cmpf ogt, %14, %15 : vector<8x64xf32>
    %17 = math.exp %14 : vector<8x64xf32>
    %cst_9 = arith.constant 1.000000e+00 : f32
    %18 = vector.broadcast %cst_9 : f32 to vector<8x64xf32>
    %19 = arith.subf %17, %18 : vector<8x64xf32>
    %20 = arith.select %16, %14, %19 : vector<8x64xi1>, vector<8x64xf32>
    %c0_10 = arith.constant 0 : index
    %c896 = arith.constant 896 : index
    %21 = vector.load %arg1[%c0_10, %c896] : memref<64x1408xf32, #tpu.memory_space<vmem>>, vector<64x4xf32>
    %cst_11 = arith.constant dense<0.000000e+00> : vector<8x4xf32>
    %22 = tpu.matmul %20, %21, %cst_11 {dimension_numbers = #tpu.dot_dimension_numbers<[1], [0], [0], [1], [0, 0, 1, 1], [], []>} : vector<8x64xf32>, vector<64x4xf32>, vector<8x4xf32> -> vector<8x4xf32>
    %c0_12 = arith.constant 0 : index
    %c1152 = arith.constant 1152 : index
    %23 = vector.load %arg1[%c0_12, %c1152] : memref<64x1408xf32, #tpu.memory_space<vmem>>, vector<1x4xf32>
    %24 = vector.broadcast %23 : vector<1x4xf32> to vector<8x4xf32>
    %25 = arith.addf %22, %24 : vector<8x4xf32>
    %cst_13 = arith.constant dense<0xFF800000> : vector<8xf32>
    %26 = vector.multi_reduction <maximumf>, %25, %cst_13 [1] : vector<8x4xf32> to vector<8xf32>
    %27 = vector.shape_cast %26 : vector<8xf32> to vector<8x1xf32>
    %28 = vector.broadcast %27 : vector<8x1xf32> to vector<8x4xf32>
    %29 = arith.subf %25, %28 : vector<8x4xf32>
    %30 = math.exp %29 : vector<8x4xf32>
    %cst_14 = arith.constant dense<0.000000e+00> : vector<8xf32>
    %31 = vector.multi_reduction <add>, %30, %cst_14 [1] : vector<8x4xf32> to vector<8xf32>
    %32 = vector.shape_cast %31 : vector<8xf32> to vector<8x1xf32>
    %33 = vector.broadcast %32 : vector<8x1xf32> to vector<8x4xf32>
    %34 = arith.divf %30, %33 : vector<8x4xf32>
    %35 = vector.extract_strided_slice %2 {offsets = [0, 0], sizes = [8, 128], strides = [1, 1]} : vector<8x512xf32> to vector<8x128xf32>
    %c0_15 = arith.constant 0 : index
    %c1280 = arith.constant 1280 : index
    %36 = vector.load %arg1[%c0_15, %c1280] : memref<64x1408xf32, #tpu.memory_space<vmem>>, vector<4x128xf32>
    %cst_16 = arith.constant dense<0.000000e+00> : vector<8x128xf32>
    %37 = tpu.matmul %34, %36, %cst_16 {dimension_numbers = #tpu.dot_dimension_numbers<[1], [0], [0], [1], [0, 0, 1, 1], [], []>} : vector<8x4xf32>, vector<4x128xf32>, vector<8x128xf32> -> vector<8x128xf32>
    %38 = arith.mulf %37, %35 : vector<8x128xf32>
    %c64_i32 = arith.constant 64 : i32
    %39 = tpu.dynamic_rotate %38 by %c64_i32 dim 1 : vector<8x128xf32>, i32 -> vector<8x128xf32>
    %40 = arith.addf %38, %39 : vector<8x128xf32>
    %c32_i32 = arith.constant 32 : i32
    %41 = tpu.dynamic_rotate %40 by %c32_i32 dim 1 : vector<8x128xf32>, i32 -> vector<8x128xf32>
    %42 = arith.addf %40, %41 : vector<8x128xf32>
    %43 = vector.extract_strided_slice %42 {offsets = [0, 0], sizes = [8, 32], strides = [1, 1]} : vector<8x128xf32> to vector<8x32xf32>
    %cst_17 = arith.constant 0.000000e+00 : f32
    %44 = vector.broadcast %cst_17 : f32 to vector<8x32xf32>
    %45 = arith.cmpf ogt, %43, %44 : vector<8x32xf32>
    %46 = math.exp %43 : vector<8x32xf32>
    %cst_18 = arith.constant 1.000000e+00 : f32
    %47 = vector.broadcast %cst_18 : f32 to vector<8x32xf32>
    %48 = arith.subf %46, %47 : vector<8x32xf32>
    %49 = arith.select %45, %43, %48 : vector<8x32xi1>, vector<8x32xf32>
    %c0_19 = arith.constant 0 : index
    %c512 = arith.constant 512 : index
    %50 = vector.load %arg1[%c0_19, %c512] : memref<64x1408xf32, #tpu.memory_space<vmem>>, vector<32x128xf32>
    %cst_20 = arith.constant dense<0.000000e+00> : vector<8x128xf32>
    %51 = tpu.matmul %49, %50, %cst_20 {dimension_numbers = #tpu.dot_dimension_numbers<[1], [0], [0], [1], [0, 0, 1, 1], [], []>} : vector<8x32xf32>, vector<32x128xf32>, vector<8x128xf32> -> vector<8x128xf32>
    %52 = vector.extract_strided_slice %2 {offsets = [0, 256], sizes = [8, 128], strides = [1, 1]} : vector<8x512xf32> to vector<8x128xf32>
    %53 = arith.addf %51, %52 : vector<8x128xf32>
    %54 = arith.mulf %37, %53 : vector<8x128xf32>
    %c64_i32_21 = arith.constant 64 : i32
    %55 = tpu.dynamic_rotate %54 by %c64_i32_21 dim 1 : vector<8x128xf32>, i32 -> vector<8x128xf32>
    %56 = arith.addf %54, %55 : vector<8x128xf32>
    %c32_i32_22 = arith.constant 32 : i32
    %57 = tpu.dynamic_rotate %56 by %c32_i32_22 dim 1 : vector<8x128xf32>, i32 -> vector<8x128xf32>
    %58 = arith.addf %56, %57 : vector<8x128xf32>
    %59 = vector.extract_strided_slice %58 {offsets = [0, 0], sizes = [8, 32], strides = [1, 1]} : vector<8x128xf32> to vector<8x32xf32>
    %cst_23 = arith.constant 0.000000e+00 : f32
    %60 = vector.broadcast %cst_23 : f32 to vector<8x32xf32>
    %61 = arith.cmpf ogt, %59, %60 : vector<8x32xf32>
    %62 = math.exp %59 : vector<8x32xf32>
    %cst_24 = arith.constant 1.000000e+00 : f32
    %63 = vector.broadcast %cst_24 : f32 to vector<8x32xf32>
    %64 = arith.subf %62, %63 : vector<8x32xf32>
    %65 = arith.select %61, %59, %64 : vector<8x32xi1>, vector<8x32xf32>
    %c0_25 = arith.constant 0 : index
    %c640 = arith.constant 640 : index
    %66 = vector.load %arg1[%c0_25, %c640] : memref<64x1408xf32, #tpu.memory_space<vmem>>, vector<32x128xf32>
    %cst_26 = arith.constant dense<0.000000e+00> : vector<8x128xf32>
    %67 = tpu.matmul %65, %66, %cst_26 {dimension_numbers = #tpu.dot_dimension_numbers<[1], [0], [0], [1], [0, 0, 1, 1], [], []>} : vector<8x32xf32>, vector<32x128xf32>, vector<8x128xf32> -> vector<8x128xf32>
    %68 = vector.extract_strided_slice %2 {offsets = [0, 384], sizes = [8, 128], strides = [1, 1]} : vector<8x512xf32> to vector<8x128xf32>
    %69 = arith.addf %67, %68 : vector<8x128xf32>
    %70 = arith.mulf %37, %69 : vector<8x128xf32>
    %c64_i32_27 = arith.constant 64 : i32
    %71 = tpu.dynamic_rotate %70 by %c64_i32_27 dim 1 : vector<8x128xf32>, i32 -> vector<8x128xf32>
    %72 = arith.addf %70, %71 : vector<8x128xf32>
    %c32_i32_28 = arith.constant 32 : i32
    %73 = tpu.dynamic_rotate %72 by %c32_i32_28 dim 1 : vector<8x128xf32>, i32 -> vector<8x128xf32>
    %74 = arith.addf %72, %73 : vector<8x128xf32>
    %c0_29 = arith.constant 0 : index
    %c0_30 = arith.constant 0 : index
    %75 = vector.load %arg2[%c0_29, %c0_30] : memref<8x128xf32, #tpu.memory_space<vmem>>, vector<8x128xf32>
    tpu.vector_store %arg2[%c0_29, %c0_30], %74 {strides = array<i32>} : memref<8x128xf32, #tpu.memory_space<vmem>>, vector<8x128xf32>,
    return
  }
}

</mosaic_0001>

<bundles_post_ra>
// kernel: tpu_custom_call.1
= control target key start
LH: loop header
LB: loop body
LE: loop exit
PB: predicated region body
PF: predicated region fallthrough
CT: control target
= control target key end

     0   :  { %7 = vsyncpa [#allocation3], 0  ;;  %s1038_s0 = inlined_call_operand.hbm [shape: f32[8,32], index: 0, kind: input, shape index: {}]   ;;  %s1039_s1 = inlined_call_operand.hbm [shape: f32[64,1408], index: 1, kind: input, shape index: {}]   ;;  %s1040_s2 = inlined_call_operand.hbm [shape: f32[8,128], index: 2, kind: output, shape index: {}]  }
   0x1   :  { %8 = vsyncpa [#allocation6], 0 }
   0x2   :  { %9 = vsyncpa [#allocation4], 0  ;;  %s921_s9 = smov [#allocation2]   ;;  %s922_s11 = smov [#allocation5]  }
   0x3   :  { %s16_s10 = sshll.u32 %s921_s9, 4  ;;  %s25_s12 = sshll.u32 %s922_s11, 4  ;;  %s17_s10 = int_to_ptr.vmem [resolvable:$true] %s16_s10  ;;  %s946_s12 = int_to_ptr.vmem [resolvable:$true] %s25_s12 }
   0x4   :  { %s849_s15 = scalar_lea.hbm %s1038_s0, 128 }
   0x5   :  { %p850_p0 = scmp.ne.s32.totalorder %s1038_s0, %s849_s15  ;;  %p853_p1 = scmp.lt.u32.totalorder %s849_s15, %s1038_s0 }
   0x7   :  { %p855_p2 = pnand %p853_p1, %p850_p0 }
   0x9   :  { %858 = shalt.err (!%p855_p2)
}
   0xa   :  { %s859_s20 = scalar_lea.vmem %s17_s10, 128  ;;  %p864_p4 = scmp.lt.s32.totalorder %s17_s10, %s17_s10 }
   0xb   :  { %p860_p3 = scmp.ne.s32.totalorder %s17_s10, %s859_s20  ;;  %p865_p5 = scmp.lt.s32.totalorder %s859_s20, %s859_s20 }
   0xd   :  { %p866_p6 = por %p865_p5, %p864_p4 }
   0xf   :  { %p867_p7 = pnand %p866_p6, %p860_p3 }
  0x11   :  { %870 = shalt.err (!%p867_p7)
}
  0x12   :  { %19 = dma.hbm_to_vmem [thread:$0]  %s1038_s0, 128, %s17_s10, [#allocation3]  }
  0x13   :  { %s871_s25 = scalar_lea.hbm %s1039_s1, 11264 }
  0x14   :  { %p872_p8 = scmp.ne.s32.totalorder %s1039_s1, %s871_s25  ;;  %p875_p9 = scmp.lt.u32.totalorder %s871_s25, %s1039_s1 }
  0x16   :  { %p877_p10 = pnand %p875_p9, %p872_p8 }
  0x18   :  { %880 = shalt.err (!%p877_p10)
}
  0x19   :  { %s881_s30 = scalar_lea.vmem %s946_s12, 11264  ;;  %p886_p12 = scmp.lt.s32.totalorder %s946_s12, %s946_s12 }
  0x1a   :  { %p882_p11 = scmp.ne.s32.totalorder %s946_s12, %s881_s30  ;;  %p887_p13 = scmp.lt.s32.totalorder %s881_s30, %s881_s30 }
  0x1c   :  { %p888_p0 = por %p887_p13, %p886_p12 }
  0x1e   :  { %p889_p1 = pnand %p888_p0, %p882_p11 }
  0x20   :  { %892 = shalt.err (!%p889_p1)
}
  0x21   :  { %s923_s0 = smov 1408   ;;  %s924_s3 = smov 88  }
  0x22   :  { %31 = dma.hbm_to_vmem [thread:$0]  %s1039_s1, 11264, %s946_s12, [#allocation6], %s923_s0, %s923_s0, %s924_s3  }
  0x23   :  { %915 = dma.done.wait [#allocation3], 128  }
  0x24   :  { %916 = vsyncadd [#allocation3], 4294967168 }
  0x25   :  { %917 = dma.done.wait [#allocation6], 11264  }
  0x26   :  { %918 = vsyncadd [#allocation6], 4294956032  ;;  %v925_v0 = vmov 0.0   ;;  %v40_v1 = vld [vmem:[#allocation5 + $0x8] sm:$0xff]  ;;  %v44_v2 = vld [vmem:[#allocation5 + $0x60] sm:$0xff]  ;;  %vm55_vm0 = vcmask 261120  }
  0x27   :  { %123 = vmatprep.mubr.f32.mxu0 %v925_v0  ;;  %194 = vmatprep.mubr.f32.mxu1 %v925_v0  ;;  %v39_v3 = vld [vmem:[#allocation5] sm:$0xff]  ;;  %v775_v4 = vpack.c.bf16 %v44_v2, %v40_v1  ;;  %v43_v5 = vld [vmem:[#allocation5 + $0x58] sm:$0xff]  ;;  %v52_v7 = vld [vmem:[#allocation5 + $0x110] sm:$0xff]  ;;  %v926_v17 = vmov 0.0|0.0   ;;  %vm927_vm1 = vmmov 0   ;;  %vm215_vm2 = vcmask 523264  }
  0x28   :  { %v48_v6 = vld [vmem:[#allocation5 + $0xb8] sm:$0xff]  ;;  %v777_v8 = vpack.c.bf16 %v43_v5, %v39_v3  ;;  %v47_v10 = vld [vmem:[#allocation5 + $0xb0] sm:$0xff]  ;;  %v51_v11 = vld [vmem:[#allocation5 + $0x108] sm:$0xff]  ;;  %vm376_vm5 = vcmask 31744   ;;  %vm392_vm6 = vcmask 1043456   ;;  %s928_s1 = smov 64  }
  0x29   :  { %v779_v9 = vpack.c.bf16 %v52_v7, %v48_v6  ;;  %776 = vmatprep.subr.bf16.mxu0 %v775_v4  ;;  %v781_v12 = vpack.c.bf16 %v51_v11, %v47_v10  ;;  %v38_v13 = vld [vmem:[#allocation2] sm:$0xff]  ;;  %v206_v14 = vld [vmem:[#allocation5 + $0x30] sm:$0xff]  ;;  %v207_v15 = vld [vmem:[#allocation5 + $0x88] sm:$0xff]  ;;  %s929_s6 = smov 32   ;;  %s930_s7 = smov [#allocation7]  }
  0x2a   :  { %778 = vmatpush1.bf16.msra.mxu0 %v777_v8  ;;  %v792_v16 = vpack.c.bf16 %v207_v15, %v206_v14  ;;  %v208_v18 = vld [vmem:[#allocation5 + $0xe0] sm:$0xff]  ;;  %v209_v19 = vld [vmem:[#allocation5 + $0x138] sm:$0xff]  ;;  %v210_v21 = vld [vmem:[#allocation5 + $0x190] sm:$0xff]  ;;  %s658_s8 = sshll.u32 %s930_s7, 4  ;;  %s659_s8 = int_to_ptr.vmem [resolvable:$true] %s658_s8 }
  0x2b   :  { %780 = vmatprep.subr.bf16.mxu0 %v779_v9  ;;  %v795_v20 = vpack.c.bf16 %v209_v19, %v208_v18  ;;  %v211_v22 = vld [vmem:[#allocation5 + $0x1e8] sm:$0xff]  ;;  %v212_v24 = vld [vmem:[#allocation5 + $0x240] sm:$0xff]  ;;  %v213_v25 = vld [vmem:[#allocation5 + $0x298] sm:$0xff]  ;;  %s893_s9 = scalar_lea.vmem %s659_s8, 128  ;;  %p898_p3 = scmp.lt.s32.totalorder %s659_s8, %s659_s8 }
  0x2c   :  { %v798_v23 = vpack.c.bf16 %v211_v22, %v210_v21  ;;  %v801_v26 = vpack.c.bf16 %v213_v25, %v212_v24  ;;  %v42_v27 = vld [vmem:[#allocation5 + $0x18] sm:$0xff]  ;;  %v46_v28 = vld [vmem:[#allocation5 + $0x70] sm:$0xff]  ;;  %v45_v31 = vld [vmem:[#allocation5 + $0x68] sm:$0xff]  ;;  %p894_p2 = scmp.ne.s32.totalorder %s659_s8, %s893_s9  ;;  %p899_p4 = scmp.lt.s32.totalorder %s893_s9, %s893_s9 }
  0x2d   :  { %v41_v29 = vld [vmem:[#allocation5 + $0x10] sm:$0xff]  ;;  %v783_v30 = vpack.c.bf16 %v46_v28, %v42_v27  ;;  %v50_v32 = vld [vmem:[#allocation5 + $0xc8] sm:$0xff]  ;;  %v54_v33 = vld [vmem:[#allocation5 + $0x120] sm:$0xff] }
  0x2e   :  { %782 = vmatpush1.bf16.msra.mxu0 %v781_v12  ;;  %v785_v34 = vpack.c.bf16 %v45_v31, %v41_v29  ;;  %v787_v35 = vpack.c.bf16 %v54_v33, %v50_v32  ;;  %v49_v36 = vld [vmem:[#allocation5 + $0xc0] sm:$0xff]  ;;  %v53_v37 = vld [vmem:[#allocation5 + $0x118] sm:$0xff]  ;;  %v295_v46 = vld [vmem:[#allocation5 + $0x90] sm:$0xff]  ;;  %p900_p5 = por %p899_p4, %p898_p3 }
  0x2f   :  { %791 = vmatprep.subr.bf16.mxu0 %v926_v17  ;;  %784 = vmatprep.subr.bf16.mxu1 %v783_v30  ;;  %v789_v38 = vpack.c.bf16 %v53_v37, %v49_v36  ;;  %v294_v45 = vld [vmem:[#allocation5 + $0x38] sm:$0xff]  ;;  %v296_v48 = vld [vmem:[#allocation5 + $0xe8] sm:$0xff]  ;;  %v297_v49 = vld [vmem:[#allocation5 + $0x140] sm:$0xff] }
  0x30   :  { %786 = vmatpush1.bf16.msra.mxu1 %v785_v34  ;;  %v804_v47 = vpack.c.bf16 %v295_v46, %v294_v45  ;;  %v807_v50 = vpack.c.bf16 %v297_v49, %v296_v48  ;;  %v298_v51 = vld [vmem:[#allocation5 + $0x198] sm:$0xff]  ;;  %v299_v52 = vld [vmem:[#allocation5 + $0x1f0] sm:$0xff]  ;;  %v300_v54 = vld [vmem:[#allocation5 + $0x248] sm:$0xff]  ;;  %p901_p6 = pnand %p900_p5, %p894_p2 }
  0x31   :  { %668 = vmatmul.mubr.msk.f32.vlgmr.msra.gmra.mrb[0].mxu0 %vm55_vm0, %v38_v13  ;;  %788 = vmatprep.subr.bf16.mxu1 %v787_v35  ;;  %v810_v53 = vpack.c.bf16 %v299_v52, %v298_v51  ;;  %v301_v55 = vld [vmem:[#allocation5 + $0x2a0] sm:$0xff]  ;;  %v302_v4 = vld [vmem:[#allocation5 + $0x48] ss:$0 sm:$0xff]  ;;  %v388_v14 = vld [vmem:[#allocation5 + $0x50] sm:$0xf] }
  0x32   :  { %793 = vmatpush3.bf16.msra.mxu0 %v792_v16  ;;  %726 = vmatprep.mubr.msk.f32.mxu0 %vm927_vm1, %v925_v0  ;;  %v813_v56 = vpack.c.bf16 %v301_v55, %v300_v54  ;;  %v214_v59 = vld [vmem:[#allocation5 + $0x40] ss:$0 sm:$0xff]  ;;  %v480_v27 = vld [vmem:[#allocation5 + $0xd0] sm:$0xff]  ;;  %v481_v28 = vld [vmem:[#allocation5 + $0x128] sm:$0xff] }
  0x33   :  { %794 = vmatprep.subr.bf16.mxu0 %v926_v17  ;;  %v478_v22 = vld [vmem:[#allocation5 + $0x20] sm:$0xff]  ;;  %v570_v45 = vld [vmem:[#allocation5 + $0x130] sm:$0xff] }
  0x34   :  { %790 = vmatpush1.bf16.msra.mxu1 %v789_v38 }
  0x35   :  { %803 = vmatprep.subr.bf16.mxu1 %v926_v17 }
  0x36   :  { %796 = vmatpush3.bf16.msra.mxu0 %v795_v20 }
  0x37   :  { %797 = vmatprep.subr.bf16.mxu0 %v926_v17  ;;  %669 = vmatmul.mubr.msk.f32.vlgmr.msra.gmra.mrb[0].mxu1 %vm55_vm0, %v38_v13 }
  0x38   :  { %745 = vmatprep.mubr.msk.f32.mxu1 %vm927_vm1, %v925_v0  ;;  %805 = vmatpush3.bf16.msra.mxu1 %v804_v47 }
  0x39   :  { %806 = vmatprep.subr.bf16.mxu1 %v926_v17 }
  0x3a   :  { %799 = vmatpush3.bf16.msra.mxu0 %v798_v23  ;;  %v479_v23 = vld [vmem:[#allocation5 + $0x78] sm:$0xff] }
  0x3b   :  { %800 = vmatprep.subr.bf16.mxu0 %v926_v17  ;;  %v816_v24 = vpack.c.bf16 %v479_v23, %v478_v22 }
  0x3c   :  { %808 = vmatpush3.bf16.msra.mxu1 %v807_v50 }
  0x3d   :  { %809 = vmatprep.subr.bf16.mxu1 %v926_v17 }
  0x3e   :  { %802 = vmatpush3.bf16.msra.mxu0 %v801_v26 }
  0x3f   :  { %748 = vmatprep.subr.mxu0 %v925_v0 }
  0x40   :  { %811 = vmatpush3.bf16.msra.mxu1 %v810_v53 }
  0x41   :  { %812 = vmatprep.subr.bf16.mxu1 %v926_v17 }
  0x44   :  { %814 = vmatpush3.bf16.msra.mxu1 %v813_v56 }
  0x45   :  { %815 = vmatprep.subr.bf16.mxu1 %v926_v17 }
 0x104   :  { %v991_v39 = vpop.f32.mrb[0].mxu0 }
 0x105   :  { %v127_v40 = vpop.f32.mrb[1].mxu0 }
 0x106   :  { %v202_v41 = vmul.f32 1.442695, %v127_v40  ;;  %vm201_vm3 = vcmp.gt.f32.partialorder %v127_v40, 0.0 }
 0x108   :  { %837 = vpow2.f32 %v202_v41 }
 0x10a   :  { %v1000_v57 = vpop.f32.mrb[0].mxu1 }
 0x10b   :  { %v1002_v58 = vpop.f32.mrb[1].mxu1 }
 0x112   :  { %v838_v42 = vpop.eup %837 }
 0x113   :  { %v670_v43 = vadd.f32 -1.0, %v838_v42 }
 0x115   :  { %v205_v44 = vsel %vm201_vm3, %v127_v40, %v670_v43  ;;  %v568_v40 = vld [vmem:[#allocation5 + $0x80] sm:$0xff] }
 0x116   :  { %727 = vmatmul.mubr.msk.f32.vlgmr.msra.gmra.mrb[2].mxu0 %vm215_vm2, %v205_v44  ;;  %v569_v44 = vld [vmem:[#allocation5 + $0xd8] sm:$0xff] }
 0x117   :  { %750 = vmatprep.mubr.msk.f32.mxu0 %vm927_vm1, %v925_v0  ;;  %749 = vmatpush3.msk.msra.mxu0 %vm392_vm6, %v388_v14  ;;  %v825_v46 = vpack.c.bf16 %v570_v45, %v569_v44 }
 0x118   :  { %821 = vmatprep.subr.bf16.mxu0 %v926_v17 }
 0x1e9   :  { %v285_v60 = vpop.f32.mrb[2].mxu0 }
 0x1ea   :  { %v286_v61 = vadd.f32 %v285_v60, %v214_v59  ;;  %v728_v62 = vpop.f32.mrb[3].mxu0 }
 0x1ec   :  { %v290_v63 = vmul.f32 1.442695, %v286_v61  ;;  %vm289_vm4 = vcmp.gt.f32.partialorder %v286_v61, 0.0 }
 0x1ee   :  { %839 = vpow2.f32 %v290_v63 }
 0x1f8   :  { %v840_v1 = vpop.eup %839 }
 0x1f9   :  { %v672_v2 = vadd.f32 -1.0, %v840_v1 }
 0x1fb   :  { %v293_v3 = vsel %vm289_vm4, %v286_v61, %v672_v2 }
 0x1fc   :  { %746 = vmatmul.mubr.msk.f32.vlgmr.msra.gmra.mrb[2].mxu1 %vm215_vm2, %v293_v3 }
 0x1fd   :  { %761 = vmatprep.mubr.msk.f32.mxu1 %vm927_vm1, %v925_v0  ;;  %817 = vmatpush3.bf16.msra.mxu1 %v816_v24 }
 0x1fe   :  { %818 = vmatprep.subr.bf16.mxu1 %v926_v17 }
 0x2cf   :  { %v372_v5 = vpop.f32.mrb[2].mxu1 }
 0x2d0   :  { %v373_v6 = vadd.f32 %v372_v5, %v302_v4  ;;  %v747_v7 = vpop.f32.mrb[3].mxu1 }
 0x2d2   :  { %v377_v8 = vsel %vm376_vm5, %v373_v6, -inf }
 0x2d3   :  { %378 = vmax.xlane.f32.xlu0 %v377_v8 }
 0x360   :  { %v379_v9 = vpop.xlane.xlu0 %378 }
 0x361   :  { %v380_v10 = vsub.f32 %v373_v6, %v379_v9 }
 0x363   :  { %v381_v11 = vmul.f32 1.442695, %v380_v10 }
 0x365   :  { %841 = vpow2.f32 %v381_v11 }
 0x36f   :  { %v842_v12 = vpop.eup %841 }
 0x370   :  { %v383_v13 = vsel %vm376_vm5, %v842_v12, 0.0 }
 0x371   :  { %384 = vadd.xlane.f32.xlu0 %v383_v13 }
 0x3fe   :  { %v385_v15 = vpop.xlane.xlu0 %384 }
 0x3ff   :  { %843 = vrcp.f32 %v385_v15 }
 0x409   :  { %v844_v16 = vpop.eup %843 }
 0x40a   :  { %v387_v18 = vmul.f32 %v844_v16, %v842_v12 }
 0x40c   :  { %751 = vmatmul.mubr.msk.f32.vlgmr.msra.gmra.mrb[4].mxu0 %vm376_vm5, %v387_v18 }
 0x40d   :  { %772 = vmatprep.mubr.msk.f32.mxu0 %vm927_vm1, %v925_v0  ;;  %v819_v0 = vpack.c.bf16 %v481_v28, %v480_v27 }
 0x40f   :  { %820 = vmatpush3.bf16.msra.mxu1 %v819_v0 }
 0x4df   :  { %v462_v19 = vpop.f32.mrb[4].mxu0 }
 0x4e0   :  { %v752_v20 = vpop.f32.mrb[5].mxu0  ;;  %v466_v21 = vmul.f32 %v462_v19, %v991_v39  ;;  %v567_v39 = vld [vmem:[#allocation5 + $0x28] sm:$0xff] }
 0x4e1   :  { %v822_v41 = vpack.c.bf16 %v568_v40, %v567_v39 }
 0x4e2   :  { %467 = vrot.lane.b32.xlu1 %v466_v21, %s928_s1 }
 0x4e3   :  { %823 = vmatpush3.bf16.msra.mxu0 %v822_v41 }
 0x4e4   :  { %824 = vmatprep.subr.bf16.mxu0 %v926_v17 }
 0x4e7   :  { %826 = vmatpush3.bf16.msra.mxu0 %v825_v46 }
 0x554   :  { %v468_v25 = vpop.permute.xlu1 %467 }
 0x555   :  { %v469_v26 = vadd.f32 %v468_v25, %v466_v21 }
 0x557   :  { %470 = vrot.lane.b32.xlu1 %v469_v26, %s929_s6 }
 0x5c9   :  { %v471_v29 = vpop.permute.xlu1 %470 }
 0x5ca   :  { %v472_v30 = vadd.f32 %v471_v29, %v469_v26 }
 0x5cc   :  { %v474_v31 = vmul.f32 1.442695, %v472_v30  ;;  %vm473_vm7 = vcmp.gt.f32.partialorder %v472_v30, 0.0 }
 0x5ce   :  { %845 = vpow2.f32 %v474_v31 }
 0x5d8   :  { %v846_v32 = vpop.eup %845 }
 0x5d9   :  { %v676_v33 = vadd.f32 -1.0, %v846_v32 }
 0x5db   :  { %v477_v34 = vsel %vm473_vm7, %v472_v30, %v676_v33 }
 0x5dc   :  { %762 = vmatmul.mubr.msk.f32.vlgmr.msra.gmra.mrb[4].mxu1 %vm55_vm0, %v477_v34 }
 0x6af   :  { %v551_v35 = vpop.f32.mrb[4].mxu1 }
 0x6b0   :  { %v552_v36 = vadd.f32 %v551_v35, %v1000_v57  ;;  %v763_v37 = vpop.f32.mrb[5].mxu1 }
 0x6b2   :  { %v555_v38 = vmul.f32 %v552_v36, %v462_v19 }
 0x6b4   :  { %556 = vrot.lane.b32.xlu0 %v555_v38, %s928_s1 }
 0x726   :  { %v557_v42 = vpop.permute.xlu0 %556 }
 0x727   :  { %v558_v43 = vadd.f32 %v557_v42, %v555_v38 }
 0x729   :  { %559 = vrot.lane.b32.xlu1 %v558_v43, %s929_s6 }
 0x79b   :  { %v560_v47 = vpop.permute.xlu1 %559 }
 0x79c   :  { %v561_v48 = vadd.f32 %v560_v47, %v558_v43 }
 0x79e   :  { %v563_v49 = vmul.f32 1.442695, %v561_v48  ;;  %vm562_vm8 = vcmp.gt.f32.partialorder %v561_v48, 0.0 }
 0x7a0   :  { %847 = vpow2.f32 %v563_v49 }
 0x7aa   :  { %v848_v50 = vpop.eup %847 }
 0x7ab   :  { %v678_v51 = vadd.f32 -1.0, %v848_v50 }
 0x7ad   :  { %v566_v52 = vsel %vm562_vm8, %v561_v48, %v678_v51 }
 0x7ae   :  { %773 = vmatmul.mubr.msk.f32.vlgmr.msra.gmra.mrb[6].mxu0 %vm55_vm0, %v566_v52 }
 0x881   :  { %v640_v53 = vpop.f32.mrb[6].mxu0 }
 0x882   :  { %v641_v54 = vadd.f32 %v640_v53, %v1002_v58  ;;  %v774_v17 = vpop.f32.mrb[7].mxu0 }
 0x884   :  { %v644_v55 = vmul.f32 %v641_v54, %v462_v19 }
 0x886   :  { %645 = vrot.lane.b32.xlu1 %v644_v55, %s928_s1 }
 0x8f8   :  { %v646_v56 = vpop.permute.xlu1 %645 }
 0x8f9   :  { %v647_v57 = vadd.f32 %v646_v56, %v644_v55 }
 0x8fb   :  { %648 = vrot.lane.b32.xlu1 %v647_v57, %s929_s6 }
 0x96d   :  { %v649_v59 = vpop.permute.xlu1 %648 }
 0x96e   :  { %v650_v60 = vadd.f32 %v649_v59, %v647_v57 }
 0x970   :  { %651 = vst [vmem:[#allocation7] sm:$0xff] %v650_v60 }
 0x971   :  { %904 = shalt.err (!%p901_p6)
}
 0x972   :  { %s905_s12 = scalar_lea.hbm %s1040_s2, 128 }
 0x973   :  { %p906_p7 = scmp.ne.s32.totalorder %s1040_s2, %s905_s12  ;;  %p909_p8 = scmp.lt.u32.totalorder %s905_s12, %s1040_s2 }
 0x975   :  { %p911_p9 = pnand %p909_p8, %p906_p7 }
 0x977   :  { %914 = shalt.err (!%p911_p9)
}
 0x978   :  { %661 = dma.vmem_to_hbm [thread:$0]  %s659_s8, 128, %s1040_s2, [#allocation4]  }
 0x979   :  { %919 = dma.done.wait [#allocation4], 128  }
 0x97a   :  { %920 = vsyncadd [#allocation4], 4294967168 }
 0x97b   :  { %665 = vsyncpa [#allocation3], 1 }
 0x97c   :  { %666 = vsyncpa [#allocation6], 1 }
 0x97d   :  { %667 = vsyncpa [#allocation4], 1 }

</bundles_post_ra>
